<compile_context>
chip_gen: v6e
topology: v6e:2x2x1
jax: 0.10.0
libtpu: 0.0.40
codegen_flags: <defaults>
</compile_context>

<pallas_src>
import jax
import jax.numpy as jnp
from jax.experimental import pallas as pl
from jax.experimental.pallas import tpu as pltpu

_LANES = 128
_BLOCK_ROWS = 8192  # 8192 x 128 f32 = 4 MiB per input block


def _cdiv(a, b):
    return -(-a // b)


def _make_mae_kernel(block_rows, is_ragged, valid_rows_in_last):
    def kernel(t_ref, p_ref, o_ref):
        i = pl.program_id(1)

        @pl.when(i == 0)
        def _():
            o_ref[...] = jnp.zeros_like(o_ref)

        diff = jnp.abs(
            p_ref[...].astype(jnp.float32) - t_ref[...].astype(jnp.float32)
        )

        if is_ragged:
            # Only the globally-last block overhangs the real rows; keep the
            # interior hot loop mask-free.
            is_last = jnp.logical_and(
                pl.program_id(0) == pl.num_programs(0) - 1,
                i == pl.num_programs(1) - 1,
            )

            @pl.when(is_last)
            def _():
                row_ids = jax.lax.broadcasted_iota(
                    jnp.int32, (block_rows, 1), 0)
                masked = jnp.where(row_ids < valid_rows_in_last, diff, 0.0)
                o_ref[...] += jnp.sum(masked, axis=0, keepdims=True)

            @pl.when(jnp.logical_not(is_last))
            def _():
                o_ref[...] += jnp.sum(diff, axis=0, keepdims=True)
        else:
            o_ref[...] += jnp.sum(diff, axis=0, keepdims=True)

    return kernel


def mae(targets, preds, block_rows_hint=_BLOCK_ROWS):
    """mean(|preds - targets|) via a Pallas TPU streaming reduction."""
    assert preds.shape == targets.shape, "preds/targets must have same shape"
    n_elems = preds.size

    t_flat = targets.reshape(-1)
    p_flat = preds.reshape(-1)

    # <128-element lane tail: tiny plain-jnp sum in the wrapper instead of a
    # whole-array jnp.pad (which would triple HBM traffic for ragged sizes).
    tail = n_elems % _LANES
    main = n_elems - tail
    tail_sum = jnp.float32(0.0)
    if tail:
        t_tail = t_flat[main:]
        p_tail = p_flat[main:]
        tail_sum = jnp.sum(
            jnp.abs(p_tail.astype(jnp.float32) - t_tail.astype(jnp.float32)))
        # Rare path: the main-part slice still materializes a copy; only hit
        # when the total element count is not a multiple of 128.
        t_flat = t_flat[:main]
        p_flat = p_flat[:main]

    if main == 0:
        return tail_sum / jnp.float32(n_elems)

    rows = main // _LANES
    if rows <= block_rows_hint:
        block_rows = rows                       # full extent (always legal)
    else:
        block_rows = (block_rows_hint // 8) * 8  # sublane-aligned big block

    total_steps = _cdiv(rows, block_rows)

    # 2 chunks only when they split evenly: no clamped/duplicate block ever
    # gets re-read.  Leading axis is "parallel" for multi-TensorCore chips.
    num_chunks = 2 if (total_steps >= 2 and total_steps % 2 == 0) else 1
    steps_per_chunk = total_steps // num_chunks

    valid_rows_in_last = rows - (total_steps - 1) * block_rows
    is_ragged = (total_steps * block_rows) > rows

    t2d = t_flat.reshape(rows, _LANES)
    p2d = p_flat.reshape(rows, _LANES)

    def in_map(c, i):
        return (c * steps_per_chunk + i, 0)

    kernel = _make_mae_kernel(block_rows, is_ragged, valid_rows_in_last)

    partials = pl.pallas_call(
        kernel,
        out_shape=jax.ShapeDtypeStruct((num_chunks, 1, _LANES), jnp.float32),
        grid_spec=pltpu.PrefetchScalarGridSpec(
            num_scalar_prefetch=0,
            grid=(num_chunks, steps_per_chunk),
            in_specs=[
                pl.BlockSpec((block_rows, _LANES), in_map),
                pl.BlockSpec((block_rows, _LANES), in_map),
            ],
            out_specs=pl.BlockSpec((None, 1, _LANES), lambda c, i: (c, 0, 0)),
        ),
        compiler_params=pltpu.CompilerParams(
            dimension_semantics=("parallel", "arbitrary"),
            vmem_limit_bytes=32 * 1024 * 1024,
        ),
    )(t2d, p2d)

    return (jnp.sum(partials) + tail_sum) / jnp.float32(n_elems)


if __name__ == "__main__":
    key = jax.random.PRNGKey(0)
    kt, kp = jax.random.split(key)

    # 1) Small NCHW inputs (batch=2, channels=4, spatial=16x16): single block.
    targets = jax.random.normal(kt, (2, 4, 16, 16), dtype=jnp.float32)
    preds = jax.random.normal(kp, (2, 4, 16, 16), dtype=jnp.float32)
    out = jax.block_until_ready(mae(targets, preds))
    ref = jnp.mean(jnp.abs(preds - targets))
    assert jnp.allclose(out, ref, atol=1e-6, rtol=1e-5), (out, ref)

    # 2) Larger single-block case.
    kt2, kp2 = jax.random.split(kp)
    t2 = jax.random.normal(kt2, (4, 16, 65, 64), dtype=jnp.float32)
    p2 = jax.random.normal(kp2, (4, 16, 65, 64), dtype=jnp.float32)
    out2 = jax.block_until_ready(mae(t2, p2))
    ref2 = jnp.mean(jnp.abs(p2 - t2))
    assert jnp.allclose(out2, ref2, atol=1e-5, rtol=1e-4), (out2, ref2)

    # 3) Multi-block, 2-chunk "parallel" axis + ragged last block
    #    (rows=1000, block=256 -> 4 steps, last block has 232 valid rows).
    kt3, kp3 = jax.random.split(kp2)
    t3 = jax.random.normal(kt3, (2, 500, 128), dtype=jnp.float32)
    p3 = jax.random.normal(kp3, (2, 500, 128), dtype=jnp.float32)
    out3 = jax.block_until_ready(mae(t3, p3, block_rows_hint=256))
    ref3 = jnp.mean(jnp.abs(p3 - t3))
    assert jnp.allclose(out3, ref3, atol=1e-5, rtol=1e-4), (out3, ref3)

    # 4) Odd step count (single chunk) + ragged last block.
    kt4, kp4 = jax.random.split(kp3)
    t4 = jax.random.normal(kt4, (1, 600, 128), dtype=jnp.float32)
    p4 = jax.random.normal(kp4, (1, 600, 128), dtype=jnp.float32)
    out4 = jax.block_until_ready(mae(t4, p4, block_rows_hint=256))
    ref4 = jnp.mean(jnp.abs(p4 - t4))
    assert jnp.allclose(out4, ref4, atol=1e-5, rtol=1e-4), (out4, ref4)

    # 5) <128-element lane tail handled in the wrapper (n = 1155 = 9*128 + 3).
    kt5, kp5 = jax.random.split(kp4)
    t5 = jax.random.normal(kt5, (3, 5, 7, 11), dtype=jnp.float32)
    p5 = jax.random.normal(kp5, (3, 5, 7, 11), dtype=jnp.float32)
    out5 = jax.block_until_ready(mae(t5, p5))
    ref5 = jnp.mean(jnp.abs(p5 - t5))
    assert jnp.allclose(out5, ref5, atol=1e-6, rtol=1e-5), (out5, ref5)

    print("KERNEL_OK")
</pallas_src>

<mosaic_0001>
module attributes {stable_mosaic.version = 11 : i64} {
  func.func @kernel(%arg0: i32, %arg1: i32, %arg2: memref<16x128xf32, #tpu.memory_space<vmem>>, %arg3: memref<16x128xf32, #tpu.memory_space<vmem>>, %arg4: memref<1x1x128xf32, #tpu.memory_space<vmem>>) attributes {dimension_semantics = [#tpu.dimension_semantics<parallel>, #tpu.dimension_semantics<arbitrary>], iteration_bounds = array<i64: 1, 1>, scalar_prefetch = 0 : i64, scratch_operands = 0 : i64, tpu.core_type = #tpu.core_type<tc>, window_params = [{transform_indices = @transform_0, window_bounds = array<i64: 16, 128>}, {transform_indices = @transform_1, window_bounds = array<i64: 16, 128>}, {transform_indices = @transform_2, window_bounds = array<i64: 1, 1, 128>}]} {
    %c0_i32 = arith.constant 0 : i32
    %0 = arith.cmpi eq, %arg1, %c0_i32 : i32
    %1 = arith.extui %0 : i1 to i32
    %c0_i32_0 = arith.constant 0 : i32
    %2 = arith.cmpi ne, %1, %c0_i32_0 : i32
    scf.if %2 {
      %cst_10 = arith.constant 0.000000e+00 : f32
      %15 = vector.broadcast %cst_10 : f32 to vector<1x128xf32>
      %c0_11 = arith.constant 0 : index
      %c0_12 = arith.constant 0 : index
      %c0_13 = arith.constant 0 : index
      %16 = vector.load %arg4[%c0_11, %c0_12, %c0_13] : memref<1x1x128xf32, #tpu.memory_space<vmem>>, vector<1x1x128xf32>
      %17 = vector.shape_cast %16 : vector<1x1x128xf32> to vector<1x128xf32>
      %18 = vector.shape_cast %15 : vector<1x128xf32> to vector<1x1x128xf32>
      tpu.vector_store %arg4[%c0_11, %c0_12, %c0_13], %18 {strides = array<i32>} : memref<1x1x128xf32, #tpu.memory_space<vmem>>, vector<1x1x128xf32>,
    } else {
    }
    %c0 = arith.constant 0 : index
    %c0_1 = arith.constant 0 : index
    %3 = vector.load %arg3[%c0, %c0_1] : memref<16x128xf32, #tpu.memory_space<vmem>>, vector<16x128xf32>
    %c0_2 = arith.constant 0 : index
    %c0_3 = arith.constant 0 : index
    %4 = vector.load %arg2[%c0_2, %c0_3] : memref<16x128xf32, #tpu.memory_space<vmem>>, vector<16x128xf32>
    %5 = arith.subf %3, %4 : vector<16x128xf32>
    %6 = math.absf %5 : vector<16x128xf32>
    %c0_4 = arith.constant 0 : index
    %c0_5 = arith.constant 0 : index
    %c0_6 = arith.constant 0 : index
    %7 = vector.load %arg4[%c0_4, %c0_5, %c0_6] : memref<1x1x128xf32, #tpu.memory_space<vmem>>, vector<1x1x128xf32>
    %8 = vector.shape_cast %7 : vector<1x1x128xf32> to vector<1x128xf32>
    %cst = arith.constant dense<0.000000e+00> : vector<128xf32>
    %9 = vector.multi_reduction <add>, %6, %cst [0] : vector<16x128xf32> to vector<128xf32>
    %10 = vector.shape_cast %9 : vector<128xf32> to vector<1x128xf32>
    %11 = arith.addf %8, %10 : vector<1x128xf32>
    %c0_7 = arith.constant 0 : index
    %c0_8 = arith.constant 0 : index
    %c0_9 = arith.constant 0 : index
    %12 = vector.load %arg4[%c0_7, %c0_8, %c0_9] : memref<1x1x128xf32, #tpu.memory_space<vmem>>, vector<1x1x128xf32>
    %13 = vector.shape_cast %12 : vector<1x1x128xf32> to vector<1x128xf32>
    %14 = vector.shape_cast %11 : vector<1x128xf32> to vector<1x1x128xf32>
    tpu.vector_store %arg4[%c0_7, %c0_8, %c0_9], %14 {strides = array<i32>} : memref<1x1x128xf32, #tpu.memory_space<vmem>>, vector<1x1x128xf32>,
    return
  }
  func.func @transform_0(%arg0: i32, %arg1: i32) -> (i32, i32) {
    %c1_i32 = arith.constant 1 : i32
    %0 = arith.muli %arg0, %c1_i32 : i32
    %1 = arith.addi %0, %arg1 : i32
    %c0_i32 = arith.constant 0 : i32
    %c0_i32_0 = arith.constant 0 : i32
    return %1, %c0_i32 : i32, i32
  }
  func.func @transform_1(%arg0: i32, %arg1: i32) -> (i32, i32) {
    %c1_i32 = arith.constant 1 : i32
    %0 = arith.muli %arg0, %c1_i32 : i32
    %1 = arith.addi %0, %arg1 : i32
    %c0_i32 = arith.constant 0 : i32
    %c0_i32_0 = arith.constant 0 : i32
    return %1, %c0_i32 : i32, i32
  }
  func.func @transform_2(%arg0: i32, %arg1: i32) -> (i32, i32, i32) {
    %c0_i32 = arith.constant 0 : i32
    %c0_i32_0 = arith.constant 0 : i32
    %c0_i32_1 = arith.constant 0 : i32
    return %arg0, %c0_i32, %c0_i32_0 : i32, i32, i32
  }
}

</mosaic_0001>

<bundles_post_ra>
// kernel: tpu_custom_call.1
= control target key start
LH: loop header
LB: loop body
LE: loop exit
PB: predicated region body
PF: predicated region fallthrough
CT: control target
= control target key end

     0   :  { %7 = vsyncpa [#allocation3], 0  ;;  %s193_s0 = inlined_call_operand.hbm [shape: f32[16,128], index: 0, kind: input, shape index: {}]   ;;  %s194_s1 = inlined_call_operand.hbm [shape: f32[16,128], index: 1, kind: input, shape index: {}]   ;;  %s195_s2 = inlined_call_operand.hbm [shape: f32[1,1,128], index: 2, kind: output, shape index: {}]  }
   0x1   :  { %8 = vsyncpa [#allocation6], 0 }
   0x2   :  { %9 = vsyncpa [#allocation4], 0  ;;  %s163_s9 = smov [#allocation2]  }
   0x3   :  { %s19_s10 = sshll.u32 %s163_s9, 4  ;;  %s20_s10 = int_to_ptr.vmem [resolvable:$true] %s19_s10 }
   0x4   :  { %s105_s11 = scalar_lea.vmem %s20_s10, 256  ;;  %p110_p1 = scmp.lt.s32.totalorder %s20_s10, %s20_s10 }
   0x5   :  { %p106_p0 = scmp.ne.s32.totalorder %s20_s10, %s105_s11  ;;  %p111_p2 = scmp.lt.s32.totalorder %s105_s11, %s105_s11 }
   0x7   :  { %p112_p3 = por %p111_p2, %p110_p1 }
   0x9   :  { %p113_p4 = pnand %p112_p3, %p106_p0 }
   0xb   :  { %116 = shalt.err (!%p113_p4)
}
   0xc   :  { %s164_s12 = smov 128   ;;  %s165_s13 = smov 8  }
   0xd   :  { %25 = dma.hbm_to_vmem [thread:$0]  %s193_s0, 256, %s20_s10, [#allocation3], %s164_s12, %s164_s12, %s165_s13  }
   0xe   :  { %s166_s16 = smov [#allocation5]  }
   0xf   :  { %s35_s17 = sshll.u32 %s166_s16, 4  ;;  %s36_s17 = int_to_ptr.vmem [resolvable:$true] %s35_s17 }
  0x10   :  { %s125_s18 = scalar_lea.vmem %s36_s17, 256  ;;  %p130_p6 = scmp.lt.s32.totalorder %s36_s17, %s36_s17 }
  0x11   :  { %p126_p5 = scmp.ne.s32.totalorder %s36_s17, %s125_s18  ;;  %p131_p7 = scmp.lt.s32.totalorder %s125_s18, %s125_s18 }
  0x13   :  { %p132_p8 = por %p131_p7, %p130_p6 }
  0x15   :  { %p133_p9 = pnand %p132_p8, %p126_p5 }
  0x17   :  { %136 = shalt.err (!%p133_p9)
}
  0x18   :  { %41 = dma.hbm_to_vmem [thread:$0]  %s194_s1, 256, %s36_s17, [#allocation6], %s164_s12, %s164_s12, %s165_s13  }
  0x19   :  { %157 = dma.done.wait [#allocation3], 256  }
  0x1a   :  { %158 = vsyncadd [#allocation3], 4294967040 }
  0x1b   :  { %159 = dma.done.wait [#allocation6], 256  }
  0x1c   :  { %160 = vsyncadd [#allocation6], 4294967040  ;;  %v167_v0 = vmov 0.0   ;;  %v57_v1 = vld [vmem:[#allocation5] sm:$0xff]  ;;  %v58_v2 = vld [vmem:[#allocation5 + $0x8] sm:$0xff]  ;;  %s168_s0 = smov [#allocation7]  }
  0x1d   :  { %56 = vst [vmem:[#allocation7] sm:$0x1] %v167_v0  ;;  %v59_v3 = vld [vmem:[#allocation2] sm:$0xff]  ;;  %v60_v4 = vld [vmem:[#allocation2 + $0x8] sm:$0xff]  ;;  %s81_s1 = sshll.u32 %s168_s0, 4  ;;  %s82_s1 = int_to_ptr.vmem [resolvable:$true] %s81_s1 }
  0x1e   :  { %v61_v5 = vsub.f32 %v57_v1, %v59_v3  ;;  %v62_v6 = vsub.f32 %v58_v2, %v60_v4  ;;  %s137_s21 = scalar_lea.vmem %s82_s1, 16  ;;  %s141_s22 = scalar_lea.vmem %s82_s1, 32 }
  0x1f   :  { %p138_p10 = scmp.ne.s32.totalorder %s82_s1, %s137_s21  ;;  %p142_p11 = scmp.lt.s32.totalorder %s82_s1, %s82_s1 }
  0x20   :  { %v63_v7 = vand.u32 2147483647, %v61_v5  ;;  %v64_v8 = vand.u32 2147483647, %v62_v6  ;;  %p143_p12 = scmp.lt.s32.totalorder %s141_s22, %s137_s21 }
  0x22   :  { %v66_v9 = vadd.f32 %v64_v8, %v63_v7  ;;  %p144_p13 = por %p143_p12, %p142_p11 }
  0x24   :  { %v67_v10 = vrot.slane %v66_v9, 4  ;;  %v65_v15 = vld [vmem:[#allocation7] sm:$0x1]  ;;  %p145_p0 = pnand %p144_p13, %p138_p10 }
  0x26   :  { %v68_v11 = vadd.f32 %v67_v10, %v66_v9 }
  0x28   :  { %v69_v12 = vrot.slane %v68_v11, 2 }
  0x2a   :  { %v70_v13 = vadd.f32 %v69_v12, %v68_v11 }
  0x2c   :  { %v71_v14 = vrot.slane %v70_v13, 1 }
  0x2e   :  { %v72_v16 = vadd.f32 %v71_v14, %v70_v13 }
  0x30   :  { %v73_v17 = vadd.f32 %v72_v16, %v65_v15 }
  0x32   :  { %74 = vst [vmem:[#allocation7] sm:$0x1] %v73_v17 }
  0x33   :  { %148 = shalt.err (!%p145_p0)
}
  0x34   :  { %84 = dma.vmem_to_hbm [thread:$0]  %s82_s1, 16, %s195_s2, [#allocation4]  }
  0x35   :  { %161 = dma.done.wait [#allocation4], 16  }
  0x36   :  { %162 = vsyncadd [#allocation4], 4294967280 }
  0x37   :  { %88 = vsyncpa [#allocation3], 1 }
  0x38   :  { %89 = vsyncpa [#allocation6], 1 }
  0x39   :  { %90 = vsyncpa [#allocation4], 1 }

</bundles_post_ra>
